<compile_context>
chip_gen: v7x
topology: tpu7x:2x2x1
jax: 0.10.0
libtpu: 0.0.40
codegen_flags: <defaults>
</compile_context>

<pallas_src>
import functools

import jax
import jax.numpy as jnp
from jax import lax
from jax.experimental import pallas as pl
from jax.experimental.pallas import tpu as pltpu

LN_EPS = 1e-5


def _round_up(a, b):
    return (a + b - 1) // b * b


def ffn_kernel(x_ref, w1_ref, b1_ref, w2_ref, b2_ref, g_ref, beta_ref,
               o_ref, acc_ref, xn_ref, *, use_layernorm, d_real):
    """Grid = (row tiles, F chunks). acc = x + b2 + sum_f relu(xn@W1_f + b1_f)@W2_f."""
    f = pl.program_id(1)

    @pl.when(f == 0)
    def _init():
        x = x_ref[...].astype(jnp.float32)
        # Residual uses the ORIGINAL x; seed the accumulator with x + b2 so the
        # epilogue is a single store.
        acc_ref[...] = x + b2_ref[...].astype(jnp.float32)
        if use_layernorm:
            d_pad = x.shape[-1]
            inv_d = 1.0 / d_real
            # PyTorch nn.LayerNorm semantics: biased variance, eps inside rsqrt.
            mean = jnp.sum(x, axis=-1, keepdims=True) * inv_d
            xc = x - mean
            if d_pad != d_real:
                # Zero the padded lanes so they don't pollute the variance.
                lane = lax.broadcasted_iota(jnp.int32, x.shape, 1)
                xc = jnp.where(lane < d_real, xc, 0.0)
            var = jnp.sum(xc * xc, axis=-1, keepdims=True) * inv_d
            xn = xc * lax.rsqrt(var + LN_EPS)
            xn = (xn * g_ref[...].astype(jnp.float32)
                  + beta_ref[...].astype(jnp.float32))
            xn_ref[...] = xn.astype(xn_ref.dtype)
        elif x_ref.dtype != xn_ref.dtype:
            # No-LN path with activation dtype != MXU dtype: cast once per tile.
            xn_ref[...] = x.astype(xn_ref.dtype)

    if use_layernorm or x_ref.dtype != xn_ref.dtype:
        xin = xn_ref[...]
    else:
        # No-LN path, dtypes already match: feed the tile straight to the MXU
        # with no f32 round trip.
        xin = x_ref[...]

    # linear1 chunk -> ReLU (dropout is identity in eval mode).
    h = jnp.dot(xin, w1_ref[...], preferred_element_type=jnp.float32)
    h = jnp.maximum(h + b1_ref[...].astype(jnp.float32), 0.0)

    # linear2 chunk, accumulated in f32.
    acc_ref[...] += jnp.dot(h.astype(w2_ref.dtype), w2_ref[...],
                            preferred_element_type=jnp.float32)

    @pl.when(f == pl.num_programs(1) - 1)
    def _finalize():
        o_ref[...] = acc_ref[...].astype(o_ref.dtype)


def transformer_ff_forward(x, params, *, use_layernorm=True, tm=None, tf=None,
                           mxu_dtype=jnp.bfloat16):
    """x: (batch, seq, res_dim). Returns same shape/dtype.

    params: w1 (D,F), b1 (F,), w2 (F,D), b2 (D,), gamma (D,), beta (D,).
    Dropout is treated as inference-mode (identity).
    mxu_dtype: dtype fed to the MXU (f32 accumulation). bf16 default for MXU
    peak; pass None to keep the parameters' native dtype (exact f32 math).
    """
    # TODO(synk): training-mode dropout (stochastic masking) not implemented;
    # forward matches PyTorch eval() behavior.
    B, S, D = x.shape
    F_DIM = params["w1"].shape[1]
    N = B * S

    w1, w2 = params["w1"], params["w2"]
    if mxu_dtype is not None and w1.dtype != jnp.dtype(mxu_dtype):
        w1 = w1.astype(mxu_dtype)
        w2 = w2.astype(mxu_dtype)

    # Lane-dense shapes: pad feature dims to multiples of 128. Weights, biases,
    # gamma, beta are zero-padded, so padded lanes stay zero end-to-end and are
    # sliced off after the kernel.
    D_pad = _round_up(D, 128)
    F_pad = _round_up(F_DIM, 128)

    x2d = x.reshape(N, D)
    if D_pad != D:
        x2d = jnp.pad(x2d, ((0, 0), (0, D_pad - D)))
    if (D_pad, F_pad) != (D, F_DIM):
        w1 = jnp.pad(w1, ((0, D_pad - D), (0, F_pad - F_DIM)))
        w2 = jnp.pad(w2, ((0, F_pad - F_DIM), (0, D_pad - D)))

    def _pad_vec(v, n):
        v = v.reshape(1, -1)
        return jnp.pad(v, ((0, 0), (0, n - v.shape[1]))) if v.shape[1] != n else v

    b1 = _pad_vec(params["b1"], F_pad)
    b2 = _pad_vec(params["b2"], D_pad)
    gamma = _pad_vec(params["gamma"], D_pad)
    beta = _pad_vec(params["beta"], D_pad)

    # ---- generation-aware VMEM budget & tile selection ----------------------
    try:
        vmem_cap = pltpu.get_tpu_info().vmem_capacity_bytes
    except Exception:
        vmem_cap = 64 << 20                          # conservative (v7x-sized)
    budget = max(vmem_cap - (16 << 20), 32 << 20)    # leave headroom

    if tm is None:
        # 512 on 128 MiB parts (v5e/v6e), 256 on 64 MiB parts (v7x).
        tm = 512 if vmem_cap >= (100 << 20) else 256
    tm = max(8, min(tm, _round_up(N, 8)))

    x_bytes = x.dtype.itemsize
    w_bytes = w1.dtype.itemsize

    def vmem_needed(tm_, tf_, resident):
        wbuf = 1 if resident else 2                        # single-buffer resident weights
        return (2 * tm_ * D_pad * x_bytes                  # x tile (double-buffered)
                + 2 * tm_ * D_pad * x_bytes                # out tile
                + tm_ * D_pad * 4                          # f32 accumulator scratch
                + tm_ * D_pad * w_bytes                    # normalized-x scratch
                + wbuf * (2 * D_pad * tf_ + tf_) * w_bytes  # W1 + W2 + b1 slabs
                + 3 * D_pad * 4                            # b2 / gamma / beta
                + tm_ * tf_ * 4                            # (tm, tf) hidden tile
                + (4 << 20))                               # compiler slack

    if tf is None:
        while tm > 128 and vmem_needed(tm, 128, False) > budget:
            tm //= 2
        if vmem_needed(tm, F_pad, True) <= budget:
            tf = F_pad                                     # weights fully resident
        else:
            tf = 128
            for cand in (4096, 2048, 1024, 512, 256):
                if cand < F_pad and F_pad % cand == 0 and \
                        vmem_needed(tm, cand, False) <= budget:
                    tf = cand
                    break

    n_f = F_pad // tf
    n_rows = pl.cdiv(N, tm)
    vmem_limit = int(min(budget, vmem_needed(tm, tf, n_f == 1) + (4 << 20)))

    # Grid-invariant operands gain nothing from double buffering.
    const_w = pl.Buffered(1) if n_f == 1 else None   # W1/W2/b1: stream when chunked
    const_v = pl.Buffered(1)                         # b2 / gamma / beta: always constant

    cost = pl.CostEstimate(
        flops=4 * N * D_pad * F_pad,
        transcendentals=N if use_layernorm else 0,
        bytes_accessed=(2 * N * D_pad * x_bytes
                        + 2 * D_pad * F_pad * w_bytes
                        + (F_pad + 4 * D_pad) * 4),
    )

    kernel = functools.partial(ffn_kernel, use_layernorm=use_layernorm, d_real=D)

    out2d = pl.pallas_call(
        kernel,
        out_shape=jax.ShapeDtypeStruct((N, D_pad), x.dtype),
        grid_spec=pltpu.PrefetchScalarGridSpec(
            num_scalar_prefetch=0,
            grid=(n_rows, n_f),
            in_specs=[
                pl.BlockSpec((tm, D_pad), lambda i, f: (i, 0)),        # x rows
                pl.BlockSpec((D_pad, tf), lambda i, f: (0, f),
                             pipeline_mode=const_w),                    # W1 slab
                pl.BlockSpec((1, tf), lambda i, f: (0, f),
                             pipeline_mode=const_w),                    # b1 slab
                pl.BlockSpec((tf, D_pad), lambda i, f: (f, 0),
                             pipeline_mode=const_w),                    # W2 slab
                pl.BlockSpec((1, D_pad), lambda i, f: (0, 0),
                             pipeline_mode=const_v),                    # b2
                pl.BlockSpec((1, D_pad), lambda i, f: (0, 0),
                             pipeline_mode=const_v),                    # gamma
                pl.BlockSpec((1, D_pad), lambda i, f: (0, 0),
                             pipeline_mode=const_v),                    # beta
            ],
            out_specs=pl.BlockSpec((tm, D_pad), lambda i, f: (i, 0)),
            scratch_shapes=[
                pltpu.VMEM((tm, D_pad), jnp.float32),   # f32 accumulator
                pltpu.VMEM((tm, D_pad), w1.dtype),      # normalized x (MXU dtype)
            ],
        ),
        compiler_params=pltpu.CompilerParams(
            dimension_semantics=("parallel", "arbitrary"),
            vmem_limit_bytes=vmem_limit,
        ),
        cost_estimate=cost,
    )(x2d, w1, b1, w2, b2, gamma, beta)

    if D_pad != D:
        out2d = out2d[:, :D]
    return out2d.reshape(B, S, D)


def init_params(key, res_dim, ff_dim, dtype=jnp.float32):
    """Deterministic init mimicking nn.Linear (uniform +/- 1/sqrt(fan_in))."""
    k1, k2, k3, k4 = jax.random.split(key, 4)
    bound1 = 1.0 / (res_dim ** 0.5)
    bound2 = 1.0 / (ff_dim ** 0.5)
    # Stored as (in, out) so the kernel does x @ W (PyTorch stores (out, in)).
    w1 = jax.random.uniform(k1, (res_dim, ff_dim), dtype, -bound1, bound1)
    b1 = jax.random.uniform(k2, (ff_dim,), dtype, -bound1, bound1)
    w2 = jax.random.uniform(k3, (ff_dim, res_dim), dtype, -bound2, bound2)
    b2 = jax.random.uniform(k4, (res_dim,), dtype, -bound2, bound2)
    gamma = jnp.ones((res_dim,), dtype)
    beta = jnp.zeros((res_dim,), dtype)
    return {"w1": w1, "b1": b1, "w2": w2, "b2": b2, "gamma": gamma, "beta": beta}


def reference_forward(x, params, *, use_layernorm=True):
    xf = x.astype(jnp.float32)
    if use_layernorm:
        mean = jnp.mean(xf, axis=-1, keepdims=True)
        var = jnp.mean((xf - mean) ** 2, axis=-1, keepdims=True)
        xn = (xf - mean) / jnp.sqrt(var + LN_EPS)
        xn = xn * params["gamma"] + params["beta"]
    else:
        xn = xf
    h = jnp.maximum(xn @ params["w1"] + params["b1"], 0.0)
    y = h @ params["w2"] + params["b2"]
    return (y + xf).astype(x.dtype)


if __name__ == "__main__":
    batch, seq, res_dim, ff_dim = 2, 8, 32, 64
    key = jax.random.PRNGKey(0)
    kx, kp = jax.random.split(key)
    x = jax.random.normal(kx, (batch, seq, res_dim), jnp.float32)
    params = init_params(kp, res_dim, ff_dim)
    ref = reference_forward(x, params)

    # Exact-precision path (native f32 on the MXU).
    out_f32 = jax.block_until_ready(transformer_ff_forward(x, params, mxu_dtype=None))
    assert out_f32.shape == x.shape and out_f32.dtype == x.dtype
    assert jnp.allclose(out_f32, ref, atol=1e-4, rtol=1e-4)

    # Default fast path: bf16 MXU inputs, f32 accumulation.
    out_bf16 = jax.block_until_ready(transformer_ff_forward(x, params))
    assert jnp.allclose(out_bf16, ref, atol=5e-2, rtol=5e-2)

    # Genuine no-LayerNorm path.
    out_noln = jax.block_until_ready(
        transformer_ff_forward(x, params, use_layernorm=False, mxu_dtype=None))
    ref_noln = reference_forward(x, params, use_layernorm=False)
    assert jnp.allclose(out_noln, ref_noln, atol=1e-4, rtol=1e-4)

    # Row count not divisible by the row tile (exercises the partial last block
    # instead of an extra HBM padding pass).
    xr = jax.random.normal(kx, (3, 5, res_dim), jnp.float32)
    out_r = jax.block_until_ready(transformer_ff_forward(xr, params, mxu_dtype=None))
    ref_r = reference_forward(xr, params)
    assert jnp.allclose(out_r, ref_r, atol=1e-4, rtol=1e-4)

    print("KERNEL_OK")
</pallas_src>

<mosaic_0001>
module attributes {stable_mosaic.version = 11 : i64} {
  func.func @ffn_kernel(%arg0: i32, %arg1: i32, %arg2: memref<16x128xf32, #tpu.memory_space<vmem>>, %arg3: memref<128x128xf32, #tpu.memory_space<vmem>>, %arg4: memref<1x128xf32, #tpu.memory_space<vmem>>, %arg5: memref<128x128xf32, #tpu.memory_space<vmem>>, %arg6: memref<1x128xf32, #tpu.memory_space<vmem>>, %arg7: memref<1x128xf32, #tpu.memory_space<vmem>>, %arg8: memref<1x128xf32, #tpu.memory_space<vmem>>, %arg9: memref<16x128xf32, #tpu.memory_space<vmem>>, %arg10: memref<16x128xf32, #tpu.memory_space<vmem>>, %arg11: memref<16x128xf32, #tpu.memory_space<vmem>>) attributes {dimension_semantics = [#tpu.dimension_semantics<parallel>, #tpu.dimension_semantics<arbitrary>], iteration_bounds = array<i64: 1, 1>, scalar_prefetch = 0 : i64, scratch_operands = 2 : i64, tpu.core_type = #tpu.core_type<tc>, window_params = [{transform_indices = @transform_0, window_bounds = array<i64: 16, 128>}, {pipeline_mode = #tpu.pipeline_mode<synchronous>, transform_indices = @transform_1, window_bounds = array<i64: 128, 128>}, {pipeline_mode = #tpu.pipeline_mode<synchronous>, transform_indices = @transform_2, window_bounds = array<i64: 1, 128>}, {pipeline_mode = #tpu.pipeline_mode<synchronous>, transform_indices = @transform_3, window_bounds = array<i64: 128, 128>}, {pipeline_mode = #tpu.pipeline_mode<synchronous>, transform_indices = @transform_4, window_bounds = array<i64: 1, 128>}, {pipeline_mode = #tpu.pipeline_mode<synchronous>, transform_indices = @transform_5, window_bounds = array<i64: 1, 128>}, {pipeline_mode = #tpu.pipeline_mode<synchronous>, transform_indices = @transform_6, window_bounds = array<i64: 1, 128>}, {transform_indices = @transform_7, window_bounds = array<i64: 16, 128>}]} {
    %c0_i32 = arith.constant 0 : i32
    %0 = arith.cmpi eq, %arg1, %c0_i32 : i32
    %1 = arith.extui %0 : i1 to i32
    %c0_i32_0 = arith.constant 0 : i32
    %2 = arith.cmpi ne, %1, %c0_i32_0 : i32
    scf.if %2 {
      %c0_16 = arith.constant 0 : index
      %c0_17 = arith.constant 0 : index
      %19 = vector.load %arg2[%c0_16, %c0_17] : memref<16x128xf32, #tpu.memory_space<vmem>>, vector<16x128xf32>
      %c0_18 = arith.constant 0 : index
      %c0_19 = arith.constant 0 : index
      %20 = vector.load %arg6[%c0_18, %c0_19] : memref<1x128xf32, #tpu.memory_space<vmem>>, vector<1x128xf32>
      %21 = vector.broadcast %20 : vector<1x128xf32> to vector<16x128xf32>
      %22 = arith.addf %19, %21 : vector<16x128xf32>
      %c0_20 = arith.constant 0 : index
      %c0_21 = arith.constant 0 : index
      %23 = vector.load %arg10[%c0_20, %c0_21] : memref<16x128xf32, #tpu.memory_space<vmem>>, vector<16x128xf32>
      tpu.vector_store %arg10[%c0_20, %c0_21], %22 {strides = array<i32>} : memref<16x128xf32, #tpu.memory_space<vmem>>, vector<16x128xf32>,
      %cst_22 = arith.constant dense<0.000000e+00> : vector<16xf32>
      %24 = vector.multi_reduction <add>, %19, %cst_22 [1] : vector<16x128xf32> to vector<16xf32>
      %25 = vector.shape_cast %24 : vector<16xf32> to vector<16x1xf32>
      %cst_23 = arith.constant 3.125000e-02 : f32
      %26 = vector.broadcast %cst_23 : f32 to vector<16x1xf32>
      %27 = arith.mulf %25, %26 : vector<16x1xf32>
      %28 = vector.broadcast %27 : vector<16x1xf32> to vector<16x128xf32>
      %29 = arith.subf %19, %28 : vector<16x128xf32>
      %30 = tpu.iota {dimensions = array<i32: 1>} : vector<16x128xi32>
      %c32_i32 = arith.constant 32 : i32
      %31 = vector.broadcast %c32_i32 : i32 to vector<16x128xi32>
      %32 = arith.cmpi slt, %30, %31 : vector<16x128xi32>
      %cst_24 = arith.constant 0.000000e+00 : f32
      %33 = vector.broadcast %cst_24 : f32 to vector<16x128xf32>
      %34 = arith.select %32, %29, %33 : vector<16x128xi1>, vector<16x128xf32>
      %35 = arith.mulf %34, %34 : vector<16x128xf32>
      %cst_25 = arith.constant dense<0.000000e+00> : vector<16xf32>
      %36 = vector.multi_reduction <add>, %35, %cst_25 [1] : vector<16x128xf32> to vector<16xf32>
      %37 = vector.shape_cast %36 : vector<16xf32> to vector<16x1xf32>
      %cst_26 = arith.constant 3.125000e-02 : f32
      %38 = vector.broadcast %cst_26 : f32 to vector<16x1xf32>
      %39 = arith.mulf %37, %38 : vector<16x1xf32>
      %cst_27 = arith.constant 9.99999974E-6 : f32
      %40 = vector.broadcast %cst_27 : f32 to vector<16x1xf32>
      %41 = arith.addf %39, %40 : vector<16x1xf32>
      %42 = math.rsqrt %41 : vector<16x1xf32>
      %43 = vector.broadcast %42 : vector<16x1xf32> to vector<16x128xf32>
      %44 = arith.mulf %34, %43 : vector<16x128xf32>
      %c0_28 = arith.constant 0 : index
      %c0_29 = arith.constant 0 : index
      %45 = vector.load %arg7[%c0_28, %c0_29] : memref<1x128xf32, #tpu.memory_space<vmem>>, vector<1x128xf32>
      %46 = vector.broadcast %45 : vector<1x128xf32> to vector<16x128xf32>
      %47 = arith.mulf %44, %46 : vector<16x128xf32>
      %c0_30 = arith.constant 0 : index
      %c0_31 = arith.constant 0 : index
      %48 = vector.load %arg8[%c0_30, %c0_31] : memref<1x128xf32, #tpu.memory_space<vmem>>, vector<1x128xf32>
      %49 = vector.broadcast %48 : vector<1x128xf32> to vector<16x128xf32>
      %50 = arith.addf %47, %49 : vector<16x128xf32>
      %c0_32 = arith.constant 0 : index
      %c0_33 = arith.constant 0 : index
      %51 = vector.load %arg11[%c0_32, %c0_33] : memref<16x128xf32, #tpu.memory_space<vmem>>, vector<16x128xf32>
      tpu.vector_store %arg11[%c0_32, %c0_33], %50 {strides = array<i32>} : memref<16x128xf32, #tpu.memory_space<vmem>>, vector<16x128xf32>,
    } else {
    }
    %c0 = arith.constant 0 : index
    %c0_1 = arith.constant 0 : index
    %3 = vector.load %arg11[%c0, %c0_1] : memref<16x128xf32, #tpu.memory_space<vmem>>, vector<16x128xf32>
    %c0_2 = arith.constant 0 : index
    %c0_3 = arith.constant 0 : index
    %4 = vector.load %arg3[%c0_2, %c0_3] : memref<128x128xf32, #tpu.memory_space<vmem>>, vector<128x128xf32>
    %cst = arith.constant dense<0.000000e+00> : vector<16x128xf32>
    %5 = tpu.matmul %3, %4, %cst {dimension_numbers = #tpu.dot_dimension_numbers<[1], [0], [0], [1], [0, 0, 1, 1], [], []>} : vector<16x128xf32>, vector<128x128xf32>, vector<16x128xf32> -> vector<16x128xf32>
    %c0_4 = arith.constant 0 : index
    %c0_5 = arith.constant 0 : index
    %6 = vector.load %arg4[%c0_4, %c0_5] : memref<1x128xf32, #tpu.memory_space<vmem>>, vector<1x128xf32>
    %7 = vector.broadcast %6 : vector<1x128xf32> to vector<16x128xf32>
    %8 = arith.addf %5, %7 : vector<16x128xf32>
    %cst_6 = arith.constant 0.000000e+00 : f32
    %9 = vector.broadcast %cst_6 : f32 to vector<16x128xf32>
    %10 = arith.maximumf %8, %9 : vector<16x128xf32>
    %c0_7 = arith.constant 0 : index
    %c0_8 = arith.constant 0 : index
    %11 = vector.load %arg10[%c0_7, %c0_8] : memref<16x128xf32, #tpu.memory_space<vmem>>, vector<16x128xf32>
    %c0_9 = arith.constant 0 : index
    %c0_10 = arith.constant 0 : index
    %12 = vector.load %arg5[%c0_9, %c0_10] : memref<128x128xf32, #tpu.memory_space<vmem>>, vector<128x128xf32>
    %cst_11 = arith.constant dense<0.000000e+00> : vector<16x128xf32>
    %13 = tpu.matmul %10, %12, %cst_11 {dimension_numbers = #tpu.dot_dimension_numbers<[1], [0], [0], [1], [0, 0, 1, 1], [], []>} : vector<16x128xf32>, vector<128x128xf32>, vector<16x128xf32> -> vector<16x128xf32>
    %14 = arith.addf %11, %13 : vector<16x128xf32>
    %c0_12 = arith.constant 0 : index
    %c0_13 = arith.constant 0 : index
    %15 = vector.load %arg10[%c0_12, %c0_13] : memref<16x128xf32, #tpu.memory_space<vmem>>, vector<16x128xf32>
    tpu.vector_store %arg10[%c0_12, %c0_13], %14 {strides = array<i32>} : memref<16x128xf32, #tpu.memory_space<vmem>>, vector<16x128xf32>,
    %c0_i32_14 = arith.constant 0 : i32
    %16 = arith.cmpi eq, %arg1, %c0_i32_14 : i32
    %17 = arith.extui %16 : i1 to i32
    %c0_i32_15 = arith.constant 0 : i32
    %18 = arith.cmpi ne, %17, %c0_i32_15 : i32
    scf.if %18 {
      %c0_16 = arith.constant 0 : index
      %c0_17 = arith.constant 0 : index
      %19 = vector.load %arg10[%c0_16, %c0_17] : memref<16x128xf32, #tpu.memory_space<vmem>>, vector<16x128xf32>
      %c0_18 = arith.constant 0 : index
      %c0_19 = arith.constant 0 : index
      %20 = vector.load %arg9[%c0_18, %c0_19] : memref<16x128xf32, #tpu.memory_space<vmem>>, vector<16x128xf32>
      tpu.vector_store %arg9[%c0_18, %c0_19], %19 {strides = array<i32>} : memref<16x128xf32, #tpu.memory_space<vmem>>, vector<16x128xf32>,
    } else {
    }
    return
  }
  func.func @transform_0(%arg0: i32, %arg1: i32) -> (i32, i32) {
    %c0_i32 = arith.constant 0 : i32
    %c0_i32_0 = arith.constant 0 : i32
    return %arg0, %c0_i32 : i32, i32
  }
  func.func @transform_1(%arg0: i32, %arg1: i32) -> (i32, i32) {
    %c0_i32 = arith.constant 0 : i32
    %c0_i32_0 = arith.constant 0 : i32
    return %c0_i32, %arg1 : i32, i32
  }
  func.func @transform_2(%arg0: i32, %arg1: i32) -> (i32, i32) {
    %c0_i32 = arith.constant 0 : i32
    %c0_i32_0 = arith.constant 0 : i32
    return %c0_i32, %arg1 : i32, i32
  }
  func.func @transform_3(%arg0: i32, %arg1: i32) -> (i32, i32) {
    %c0_i32 = arith.constant 0 : i32
    %c0_i32_0 = arith.constant 0 : i32
    return %arg1, %c0_i32 : i32, i32
  }
  func.func @transform_4(%arg0: i32, %arg1: i32) -> (i32, i32) {
    %c0_i32 = arith.constant 0 : i32
    %c0_i32_0 = arith.constant 0 : i32
    %c0_i32_1 = arith.constant 0 : i32
    return %c0_i32, %c0_i32_0 : i32, i32
  }
  func.func @transform_5(%arg0: i32, %arg1: i32) -> (i32, i32) {
    %c0_i32 = arith.constant 0 : i32
    %c0_i32_0 = arith.constant 0 : i32
    %c0_i32_1 = arith.constant 0 : i32
    return %c0_i32, %c0_i32_0 : i32, i32
  }
  func.func @transform_6(%arg0: i32, %arg1: i32) -> (i32, i32) {
    %c0_i32 = arith.constant 0 : i32
    %c0_i32_0 = arith.constant 0 : i32
    %c0_i32_1 = arith.constant 0 : i32
    return %c0_i32, %c0_i32_0 : i32, i32
  }
  func.func @transform_7(%arg0: i32, %arg1: i32) -> (i32, i32) {
    %c0_i32 = arith.constant 0 : i32
    %c0_i32_0 = arith.constant 0 : i32
    return %arg0, %c0_i32 : i32, i32
  }
}

</mosaic_0001>

<bundles_post_ra>
// kernel: tpu_custom_call.1
= control target key start
LH: loop header
LB: loop body
LE: loop exit
PB: predicated region body
PF: predicated region fallthrough
CT: control target
= control target key end

     0   :  { %12 = vsyncpa [#allocation5], 0  ;;  %s779_s0 = inlined_call_operand.hbm [shape: f32[16,128], index: 0, kind: input, shape index: {}]   ;;  %s780_s1 = inlined_call_operand.hbm [shape: f32[128,128], index: 1, kind: input, shape index: {}]   ;;  %s781_s2 = inlined_call_operand.vmem [shape: f32[1,128], index: 2, kind: input, shape index: {}]   ;;  %s782_s3 = inlined_call_operand.hbm [shape: f32[128,128], index: 3, kind: input, shape index: {}]   ;;  %s783_s4 = inlined_call_operand.vmem [shape: f32[1,128], index: 4, kind: input, shape index: {}]   ;;  %s784_s5 = inlined_call_operand.vmem [shape: f32[1,128], index: 5, kind: input, shape index: {}]   ;;  %s785_s6 = inlined_call_operand.vmem [shape: f32[1,128], index: 6, kind: input, shape index: {}]   ;;  %s786_s7 = inlined_call_operand.hbm [shape: f32[16,128], index: 7, kind: output, shape index: {}]  }
   0x1   :  { %13 = vsyncpa [#allocation8], 0 }
   0x2   :  { %14 = vsyncpa [#allocation6], 0  ;;  %s634_s24 = smov [#allocation7]   ;;  %s635_s26 = smov [#allocation4]  }
   0x3   :  { %s32_s25 = sshll.u32 %s634_s24, 4  ;;  %s20_s27 = sshll.u32 %s635_s26, 4  ;;  %s33_s25 = int_to_ptr.vmem [resolvable:$true] %s32_s25  ;;  %s680_s27 = int_to_ptr.vmem [resolvable:$true] %s20_s27 }
   0x4   :  { %s540_s30 = scalar_lea.hbm %s780_s1, 2048 }
   0x5   :  { %p541_p0 = scmp.ne.s32.totalorder %s780_s1, %s540_s30  ;;  %p544_p1 = scmp.lt.u32.totalorder %s540_s30, %s780_s1 }
   0x7   :  { %p546_p2 = pnand %p544_p1, %p541_p0 }
   0x9   :  { %549 = shalt.err (!%p546_p2)
}
   0xa   :  { %s550_s12 = scalar_lea.vmem %s33_s25, 2048  ;;  %p555_p4 = scmp.lt.s32.totalorder %s33_s25, %s33_s25 }
   0xb   :  { %p551_p3 = scmp.ne.s32.totalorder %s33_s25, %s550_s12  ;;  %p556_p5 = scmp.lt.s32.totalorder %s550_s12, %s550_s12 }
   0xd   :  { %p557_p6 = por %p556_p5, %p555_p4 }
   0xf   :  { %p558_p7 = pnand %p557_p6, %p551_p3 }
  0x11   :  { %561 = shalt.err (!%p558_p7)
}
  0x12   :  { %s636_s13 = smov 128   ;;  %s637_s14 = smov 8  }
  0x13   :  { %38 = dma.hbm_to_vmem [thread:$0]  %s780_s1, 2048, %s33_s25, [#allocation8], %s636_s13, %s636_s13, %s637_s14  }
  0x14   :  { %s562_s19 = scalar_lea.hbm %s779_s0, 256 }
  0x15   :  { %p563_p8 = scmp.ne.s32.totalorder %s779_s0, %s562_s19  ;;  %p566_p9 = scmp.lt.u32.totalorder %s562_s19, %s779_s0 }
  0x17   :  { %p568_p10 = pnand %p566_p9, %p563_p8 }
  0x19   :  { %571 = shalt.err (!%p568_p10)
}
  0x1a   :  { %s572_s24 = scalar_lea.vmem %s680_s27, 256  ;;  %p577_p12 = scmp.lt.s32.totalorder %s680_s27, %s680_s27 }
  0x1b   :  { %p573_p11 = scmp.ne.s32.totalorder %s680_s27, %s572_s24  ;;  %p578_p13 = scmp.lt.s32.totalorder %s572_s24, %s572_s24 }
  0x1d   :  { %p579_p0 = por %p578_p13, %p577_p12 }
  0x1f   :  { %p580_p1 = pnand %p579_p0, %p573_p11 }
  0x21   :  { %583 = shalt.err (!%p580_p1)
}
  0x22   :  { %26 = dma.hbm_to_vmem [thread:$0]  %s779_s0, 256, %s680_s27, [#allocation5], %s636_s13, %s636_s13, %s637_s14  }
  0x23   :  { %s638_s26 = smov [#allocation9]   ;;  %s584_s8 = scalar_lea.hbm %s782_s3, 2048 }
  0x24   :  { %s46_s28 = sshll.u32 %s638_s26, 4  ;;  %p585_p2 = scmp.ne.s32.totalorder %s782_s3, %s584_s8  ;;  %s47_s28 = int_to_ptr.vmem [resolvable:$true] %s46_s28 }
  0x25   :  { %p588_p3 = scmp.lt.u32.totalorder %s584_s8, %s782_s3 }
  0x27   :  { %p590_p4 = pnand %p588_p3, %p585_p2 }
  0x29   :  { %593 = shalt.err (!%p590_p4)
}
  0x2a   :  { %s594_s15 = scalar_lea.vmem %s47_s28, 2048  ;;  %p599_p6 = scmp.lt.s32.totalorder %s47_s28, %s47_s28 }
  0x2b   :  { %p595_p5 = scmp.ne.s32.totalorder %s47_s28, %s594_s15  ;;  %p600_p7 = scmp.lt.s32.totalorder %s594_s15, %s594_s15 }
  0x2d   :  { %p601_p8 = por %p600_p7, %p599_p6 }
  0x2f   :  { %p602_p9 = pnand %p601_p8, %p595_p5 }
  0x31   :  { %605 = shalt.err (!%p602_p9)
}
  0x32   :  { %52 = dma.hbm_to_vmem [thread:$0]  %s782_s3, 2048, %s47_s28, [#allocation8], %s636_s13, %s636_s13, %s637_s14  }
  0x33   :  { %628 = dma.done.wait [#allocation5], 256  }
  0x34   :  { %629 = vsyncadd [#allocation5], 4294967040 }
  0x35   :  { %630 = dma.done.wait [#allocation8], 4096  }
  0x36   :  { %631 = vsyncadd [#allocation8], 4294963200  ;;  %v732_v0 = vld [vmem:[#allocation4] sm:$0xff]  ;;  %v735_v1 = vld [vmem:[#allocation4 + $0x8] sm:$0xff]  ;;  %v93_v8 = vlaneseq  ;;  %s639_s21 = smov [#allocation10]  }
  0x37   :  { %85 = vadd.xlane.f32.xlu0 %v732_v0  ;;  %v134_v2 = vld [vmem:[#allocation7] sm:$0xff]  ;;  %v135_v3 = vld [vmem:[#allocation7 + $0x8] sm:$0xff]  ;;  %v136_v4 = vld [vmem:[#allocation7 + $0x10] sm:$0xff]  ;;  %s343_s22 = sshll.u32 %s639_s21, 4  ;;  %s344_s22 = int_to_ptr.vmem [resolvable:$true] %s343_s22 }
  0x38   :  { %v466_v5 = vpack.c.bf16 %v135_v3, %v134_v2  ;;  %v137_v6 = vld [vmem:[#allocation7 + $0x18] sm:$0xff]  ;;  %v94_v9 = vand.u32 127, %v93_v8  ;;  %v138_v20 = vld [vmem:[#allocation7 + $0x20] sm:$0xff]  ;;  %v139_v21 = vld [vmem:[#allocation7 + $0x28] sm:$0xff]  ;;  %p611_p11 = scmp.lt.s32.totalorder %s344_s22, %s344_s22 }
  0x39   :  { %v470_v7 = vpack.c.bf16 %v137_v6, %v136_v4  ;;  %v474_v22 = vpack.c.bf16 %v139_v21, %v138_v20  ;;  %v140_v23 = vld [vmem:[#allocation7 + $0x30] sm:$0xff]  ;;  %v141_v24 = vld [vmem:[#allocation7 + $0x38] sm:$0xff]  ;;  %v142_v26 = vld [vmem:[#allocation7 + $0x40] sm:$0xff] }
  0x3a   :  { %467 = vmatprep.subr.bf16.mxu0 %v466_v5  ;;  %vm95_vm0 = vcmp.lt.s32.totalorder %v94_v9, 32  ;;  %v478_v25 = vpack.c.bf16 %v141_v24, %v140_v23  ;;  %v143_v27 = vld [vmem:[#allocation7 + $0x48] sm:$0xff]  ;;  %v144_v29 = vld [vmem:[#allocation7 + $0x50] sm:$0xff]  ;;  %v145_v30 = vld [vmem:[#allocation7 + $0x58] sm:$0xff] }
  0x3b   :  { %87 = vadd.xlane.f32.xlu0 %v735_v1  ;;  %469 = vmatpush3.bf16.msra.mxu0 %v466_v5  ;;  %v482_v28 = vpack.c.bf16 %v143_v27, %v142_v26  ;;  %v146_v31 = vld [vmem:[#allocation7 + $0x60] sm:$0xff]  ;;  %v486_v32 = vpack.c.bf16 %v145_v30, %v144_v29  ;;  %v147_v33 = vld [vmem:[#allocation7 + $0x68] sm:$0xff]  ;;  %v148_v35 = vld [vmem:[#allocation7 + $0x70] sm:$0xff] }
  0x3c   :  { %471 = vmatprep.subr.bf16.mxu0 %v470_v7  ;;  %v490_v34 = vpack.c.bf16 %v147_v33, %v146_v31  ;;  %v149_v36 = vld [vmem:[#allocation7 + $0x78] sm:$0xff]  ;;  %v236_v38 = vld [vmem:[#allocation9] sm:$0xff]  ;;  %v237_v39 = vld [vmem:[#allocation9 + $0x8] sm:$0xff] }
  0x3d   :  { %v494_v37 = vpack.c.bf16 %v149_v36, %v148_v35  ;;  %v238_v40 = vld [vmem:[#allocation9 + $0x10] sm:$0xff]  ;;  %v498_v41 = vpack.c.bf16 %v237_v39, %v236_v38  ;;  %v239_v42 = vld [vmem:[#allocation9 + $0x18] sm:$0xff]  ;;  %v240_v44 = vld [vmem:[#allocation9 + $0x20] sm:$0xff] }
  0x3e   :  { %v502_v43 = vpack.c.bf16 %v239_v42, %v238_v40  ;;  %v241_v45 = vld [vmem:[#allocation9 + $0x28] sm:$0xff]  ;;  %v242_v47 = vld [vmem:[#allocation9 + $0x30] sm:$0xff]  ;;  %v243_v48 = vld [vmem:[#allocation9 + $0x38] sm:$0xff] }
  0x3f   :  { %473 = vmatpush3.bf16.msra.mxu0 %v470_v7  ;;  %499 = vmatprep.subr.bf16.mxu1 %v498_v41  ;;  %v506_v46 = vpack.c.bf16 %v241_v45, %v240_v44  ;;  %v510_v49 = vpack.c.bf16 %v243_v48, %v242_v47  ;;  %v244_v50 = vld [vmem:[#allocation9 + $0x40] sm:$0xff]  ;;  %v245_v51 = vld [vmem:[#allocation9 + $0x48] sm:$0xff]  ;;  %v246_v53 = vld [vmem:[#allocation9 + $0x50] sm:$0xff] }
  0x40   :  { %475 = vmatprep.subr.bf16.mxu0 %v474_v22  ;;  %501 = vmatpush3.bf16.msra.mxu1 %v498_v41  ;;  %v514_v52 = vpack.c.bf16 %v245_v51, %v244_v50  ;;  %v247_v54 = vld [vmem:[#allocation9 + $0x58] sm:$0xff]  ;;  %v248_v56 = vld [vmem:[#allocation9 + $0x60] sm:$0xff]  ;;  %v249_v57 = vld [vmem:[#allocation9 + $0x68] sm:$0xff] }
  0x41   :  { %503 = vmatprep.subr.bf16.mxu1 %v502_v43  ;;  %v518_v55 = vpack.c.bf16 %v247_v54, %v246_v53  ;;  %v522_v58 = vpack.c.bf16 %v249_v57, %v248_v56  ;;  %v357_v4 = vld [vmem:[%s784_s5] ss:$0 sm:$0xff] }
  0x42   :  { %v358_v6 = vld [vmem:[%s785_s6] ss:$0 sm:$0xff] }
  0x43   :  { %477 = vmatpush3.bf16.msra.mxu0 %v474_v22  ;;  %v356_v23 = vld [vmem:[%s783_s4] ss:$0 sm:$0xff] }
  0x44   :  { %479 = vmatprep.subr.bf16.mxu0 %v478_v25  ;;  %505 = vmatpush3.bf16.msra.mxu1 %v502_v43  ;;  %v82_v24 = vadd.f32 %v356_v23, %v735_v1 }
  0x45   :  { %507 = vmatprep.subr.bf16.mxu1 %v506_v46 }
  0x47   :  { %481 = vmatpush3.bf16.msra.mxu0 %v478_v25  ;;  %v81_v25 = vadd.f32 %v356_v23, %v732_v0 }
  0x48   :  { %483 = vmatprep.subr.bf16.mxu0 %v482_v28  ;;  %509 = vmatpush3.bf16.msra.mxu1 %v506_v46 }
  0x49   :  { %511 = vmatprep.subr.bf16.mxu1 %v510_v49 }
  0x4b   :  { %485 = vmatpush3.bf16.msra.mxu0 %v482_v28 }
  0x4c   :  { %487 = vmatprep.subr.bf16.mxu0 %v486_v32  ;;  %513 = vmatpush3.bf16.msra.mxu1 %v510_v49 }
  0x4d   :  { %515 = vmatprep.subr.bf16.mxu1 %v514_v52 }
  0x4f   :  { %489 = vmatpush3.bf16.msra.mxu0 %v486_v32 }
  0x50   :  { %491 = vmatprep.subr.bf16.mxu0 %v490_v34  ;;  %517 = vmatpush3.bf16.msra.mxu1 %v514_v52 }
  0x51   :  { %519 = vmatprep.subr.bf16.mxu1 %v518_v55 }
  0x53   :  { %493 = vmatpush3.bf16.msra.mxu0 %v490_v34 }
  0x54   :  { %495 = vmatprep.subr.bf16.mxu0 %v494_v37  ;;  %521 = vmatpush3.bf16.msra.mxu1 %v518_v55 }
  0x55   :  { %523 = vmatprep.subr.bf16.mxu1 %v522_v58 }
  0x57   :  { %497 = vmatpush3.bf16.msra.mxu0 %v494_v37 }
  0x58   :  { %525 = vmatpush3.bf16.msra.mxu1 %v522_v58 }
  0xc4   :  { %v86_v10 = vpop.xlane.xlu0 %85 }
  0xc5   :  { %v89_v11 = vmul.f32 0.03125, %v86_v10 }
  0xc7   :  { %v91_v12 = vsub.f32 %v732_v0, %v89_v11 }
  0xc8   :  { %v88_v13 = vpop.xlane.xlu0 %87 }
  0xc9   :  { %v90_v14 = vmul.f32 0.03125, %v88_v13  ;;  %v739_v15 = vsel %vm95_vm0, %v91_v12, 0.0  ;;  %v250_v13 = vld [vmem:[#allocation9 + $0x70] sm:$0xff] }
  0xca   :  { %v98_v16 = vmul.f32 %v739_v15, %v739_v15 }
  0xcb   :  { %v92_v17 = vsub.f32 %v735_v1, %v90_v14  ;;  %v251_v14 = vld [vmem:[#allocation9 + $0x78] sm:$0xff] }
  0xcc   :  { %100 = vadd.xlane.f32.xlu1 %v98_v16  ;;  %v526_v16 = vpack.c.bf16 %v251_v14, %v250_v13 }
  0xcd   :  { %v744_v18 = vsel %vm95_vm0, %v92_v17, 0.0 }
  0xce   :  { %v99_v19 = vmul.f32 %v744_v18, %v744_v18  ;;  %527 = vmatprep.subr.bf16.mxu1 %v526_v16 }
  0xcf   :  { %529 = vmatpush3.bf16.msra.mxu1 %v526_v16 }
  0xd0   :  { %102 = vadd.xlane.f32.xlu1 %v99_v19 }
 0x159   :  { %v101_v59 = vpop.xlane.xlu1 %100 }
 0x15a   :  { %v104_v60 = vmul.f32 0.03125, %v101_v59 }
 0x15c   :  { %v106_v61 = vadd.f32 1e-05, %v104_v60 }
 0x15d   :  { %v103_v62 = vpop.xlane.xlu1 %102 }
 0x15e   :  { %536 = vrsqrt.f32 %v106_v61  ;;  %v105_v63 = vmul.f32 0.03125, %v103_v62 }
 0x160   :  { %v107_v2 = vadd.f32 1e-05, %v105_v63 }
 0x162   :  { %538 = vrsqrt.f32 %v107_v2 }
 0x168   :  { %v537_v3 = vpop.eup %536 }
 0x169   :  { %v110_v5 = vmul.f32 %v537_v3, %v739_v15  ;;  %v359_v15 = vld [vmem:[%s781_s2] ss:$0 sm:$0xff]  ;;  %s606_s2 = scalar_lea.vmem %s344_s22, 256 }
 0x16a   :  { %p607_p10 = scmp.ne.s32.totalorder %s344_s22, %s606_s2  ;;  %p612_p12 = scmp.lt.s32.totalorder %s606_s2, %s606_s2 }
 0x16b   :  { %v119_v7 = vmul.f32 %v357_v4, %v110_v5 }
 0x16c   :  { %v539_v8 = vpop.eup %538  ;;  %p613_p13 = por %p612_p12, %p611_p11 }
 0x16d   :  { %v111_v9 = vmul.f32 %v539_v8, %v744_v18  ;;  %v128_v10 = vadd.f32 %v358_v6, %v119_v7 }
 0x16e   :  { %p614_p0 = pnand %p613_p13, %p607_p10 }
 0x16f   :  { %v120_v11 = vmul.f32 %v357_v4, %v111_v9  ;;  %428 = vmatprep.mubr.f32.mxu0 %v128_v10 }
 0x171   :  { %v129_v12 = vadd.f32 %v358_v6, %v120_v11 }
 0x173   :  { %429 = vmatmul.mubr.f32.vlgmr.msra.gmra.mrb[0].mxu0 %v129_v12 }
 0x246   :  { %v430_v17 = vpop.f32.mrb[0].mxu0 }
 0x247   :  { %v229_v19 = vadd.f32 %v430_v17, %v359_v15  ;;  %v223_v20 = vpop.f32.mrb[1].mxu0 }
 0x248   :  { %v224_v21 = vadd.f32 %v359_v15, %v223_v20 }
 0x249   :  { %v233_v18 = vmax.f32 %v229_v19, 0.0 }
 0x24a   :  { %v232_v22 = vmax.f32 %v224_v21, 0.0 }
 0x24c   :  { %463 = vmatprep.mubr.f32.mxu1 %v232_v22 }
 0x24d   :  { %464 = vmatmul.mubr.f32.vlgmr.msra.gmra.mrb[0].mxu1 %v233_v18 }
 0x320   :  { %v465_v26 = vpop.f32.mrb[0].mxu1 }
 0x321   :  { %v328_v27 = vadd.f32 %v465_v26, %v82_v24  ;;  %v318_v28 = vpop.f32.mrb[1].mxu1 }
 0x322   :  { %v327_v29 = vadd.f32 %v318_v28, %v81_v25 }
 0x323   :  { %337 = vst [vmem:[#allocation10 + $0x8] sm:$0xff] %v328_v27 }
 0x324   :  { %336 = vst [vmem:[#allocation10] sm:$0xff] %v327_v29 }
 0x325   :  { %617 = shalt.err (!%p614_p0)
}
 0x326   :  { %s618_s24 = scalar_lea.hbm %s786_s7, 256 }
 0x327   :  { %p619_p1 = scmp.ne.s32.totalorder %s786_s7, %s618_s24  ;;  %p622_p2 = scmp.lt.u32.totalorder %s618_s24, %s786_s7 }
 0x329   :  { %p624_p3 = pnand %p622_p2, %p619_p1 }
 0x32b   :  { %627 = shalt.err (!%p624_p3)
}
 0x32c   :  { %349 = dma.vmem_to_hbm [thread:$0]  %s344_s22, 256, %s786_s7, [#allocation6], %s636_s13, %s636_s13, %s637_s14  }
 0x32d   :  { %632 = dma.done.wait [#allocation6], 256  }
 0x32e   :  { %633 = vsyncadd [#allocation6], 4294967040 }
 0x32f   :  { %353 = vsyncpa [#allocation5], 1 }
 0x330   :  { %354 = vsyncpa [#allocation8], 1 }
 0x331   :  { %355 = vsyncpa [#allocation6], 1 }

</bundles_post_ra>
